<compile_context>
chip_gen: v7x
topology: tpu7x:2x2x1
jax: 0.10.0
libtpu: 0.0.40
codegen_flags: <defaults>
</compile_context>

<pallas_src>
import functools

import jax
import jax.numpy as jnp
from jax.experimental import pallas as pl
from jax.experimental.pallas import tpu as pltpu


# ----------------------------------------------------------------------------
# Kernel
# ----------------------------------------------------------------------------
def mlp_kernel(x_ref, w1_ref, b1_ref, w2t_ref, b2_ref, o_ref):
    """out = sigmoid(x @ w1 + b1) @ w2 + b2, computed on VPU/EUP (no MXU).

    Contractions are degenerate here (K = n_in = 3, N = n_out = 1): an MXU matmul
    would be >97% zero padding, so:
      * hidden layer = n_in broadcast multiply-adds (VPU)
      * output layer = n_out row dot-products via a lane reduction (VPU + XLU)
    """
    x = x_ref[...].astype(jnp.float32)          # (TB, n_in)
    n_in = w1_ref.shape[0]
    n_out = w2t_ref.shape[0]

    # Hidden layer: (TB, n_hidden) via broadcast FMAs (static unroll, tiny n_in).
    h = x[:, 0:1] * w1_ref[0:1, :]
    for k in range(1, n_in):
        h = h + x[:, k:k + 1] * w1_ref[k:k + 1, :]
    h = jax.nn.sigmoid(h + b1_ref[...])         # EUP transcendental

    # Output layer: per-output-column dot product (avoids N=1 MXU padding).
    cols = [
        jnp.sum(h * w2t_ref[j:j + 1, :], axis=-1, keepdims=True)
        for j in range(n_out)
    ]
    out = (cols[0] if n_out == 1 else jnp.concatenate(cols, axis=-1)) + b2_ref[...]

    # TODO(synk): for very large B, present the output lane-dense (map batch -> lanes)
    # instead of a (TB, 1) column to avoid masked 1-lane stores.
    o_ref[...] = out.astype(o_ref.dtype)


# ----------------------------------------------------------------------------
# Wrapper
# ----------------------------------------------------------------------------
def prepare_params(w1, b1, w2, b2):
    """One-time parameter layout prep (kept out of the hot call path)."""
    n_hidden = w1.shape[1]
    n_out = w2.shape[1]
    return (
        w1,                         # (n_in, n_hidden)
        b1.reshape(1, n_hidden),    # (1, n_hidden)
        w2.T,                       # (n_out, n_hidden): rows broadcast along lanes
        b2.reshape(1, n_out),       # (1, n_out)
    )


@functools.partial(jax.jit, static_argnames=("tb",))
def mlleaks_mlp_forward(x, params, *, tb=2048):
    """x: (B, n_in); params from prepare_params(). Returns (B, n_out)."""
    w1, b1_2d, w2_t, b2_2d = params
    B, n_in = x.shape
    n_hidden = w1.shape[1]
    n_out = w2_t.shape[0]

    if B <= tb:
        # Tiny batch: single whole-array VMEM block, no grid/pipeline machinery.
        tile_b, b_pad, grid = B, B, None
    else:
        tile_b = tb                                  # multiple of 8 (sublane aligned)
        b_pad = pl.cdiv(B, tile_b) * tile_b
        grid = (b_pad // tile_b,)

    x_in = x if b_pad == B else jnp.pad(x, ((0, b_pad - B), (0, 0)))

    itemsize = jnp.dtype(x.dtype).itemsize
    cost = pl.CostEstimate(
        flops=2 * b_pad * (n_in * n_hidden + n_hidden * n_out),
        transcendentals=b_pad * n_hidden,
        bytes_accessed=itemsize * (b_pad * (n_in + n_out)
                                   + w1.size + b1_2d.size + w2_t.size + b2_2d.size),
    )

    if grid is None:
        out = pl.pallas_call(
            mlp_kernel,
            out_shape=jax.ShapeDtypeStruct((b_pad, n_out), x.dtype),
            in_specs=[pl.BlockSpec(memory_space=pltpu.MemorySpace.VMEM)] * 5,
            out_specs=pl.BlockSpec(memory_space=pltpu.MemorySpace.VMEM),
            cost_estimate=cost,
        )(x_in, w1, b1_2d, w2_t, b2_2d)
    else:
        out = pl.pallas_call(
            mlp_kernel,
            out_shape=jax.ShapeDtypeStruct((b_pad, n_out), x.dtype),
            grid_spec=pltpu.PrefetchScalarGridSpec(
                num_scalar_prefetch=0,
                grid=grid,
                in_specs=[
                    pl.BlockSpec((tile_b, n_in), lambda i: (i, 0)),      # streamed
                    pl.BlockSpec((n_in, n_hidden), lambda i: (0, 0)),    # resident
                    pl.BlockSpec((1, n_hidden), lambda i: (0, 0)),       # resident
                    pl.BlockSpec((n_out, n_hidden), lambda i: (0, 0)),   # resident
                    pl.BlockSpec((1, n_out), lambda i: (0, 0)),          # resident
                ],
                out_specs=pl.BlockSpec((tile_b, n_out), lambda i: (i, 0)),
            ),
            compiler_params=pltpu.CompilerParams(
                dimension_semantics=("parallel",)),   # megacore-shard batch tiles
            cost_estimate=cost,
        )(x_in, w1, b1_2d, w2_t, b2_2d)

    return out if b_pad == B else out[:B]


def init_params(key, n_in=3, n_hidden=64, n_out=1, dtype=jnp.float32):
    """Deterministic init mimicking PyTorch nn.Linear default:
       U(-1/sqrt(fan_in), 1/sqrt(fan_in)) for both weight and bias."""
    k1, k2, k3, k4 = jax.random.split(key, 4)
    bound1 = 1.0 / jnp.sqrt(jnp.array(n_in, dtype))
    bound2 = 1.0 / jnp.sqrt(jnp.array(n_hidden, dtype))
    w1 = jax.random.uniform(k1, (n_in, n_hidden), dtype, -bound1, bound1)
    b1 = jax.random.uniform(k2, (n_hidden,), dtype, -bound1, bound1)
    w2 = jax.random.uniform(k3, (n_hidden, n_out), dtype, -bound2, bound2)
    b2 = jax.random.uniform(k4, (n_out,), dtype, -bound2, bound2)
    return w1, b1, w2, b2


if __name__ == "__main__":
    key = jax.random.PRNGKey(0)
    kx, kp, kx2 = jax.random.split(key, 3)

    n_in, n_hidden, n_out = 3, 64, 1
    w1, b1, w2, b2 = init_params(kp, n_in, n_hidden, n_out)
    params = prepare_params(w1, b1, w2, b2)

    def ref_fn(xx):
        return jax.nn.sigmoid(xx @ w1 + b1) @ w2 + b2

    # Small batch (module-like shapes): single-block, no-grid path.
    x_small = jax.random.normal(kx, (2, n_in), jnp.float32)
    out_small = jax.block_until_ready(mlleaks_mlp_forward(x_small, params))
    assert out_small.shape == (2, n_out)
    assert jnp.allclose(out_small, ref_fn(x_small), atol=1e-5, rtol=1e-5)

    # Larger batch: exercises the batch-tiled "parallel" path with padding.
    x_big = jax.random.normal(kx2, (1000, n_in), jnp.float32)
    out_big = jax.block_until_ready(mlleaks_mlp_forward(x_big, params, tb=256))
    assert out_big.shape == (1000, n_out)
    assert jnp.allclose(out_big, ref_fn(x_big), atol=1e-5, rtol=1e-5)

    print("KERNEL_OK")
</pallas_src>

<mosaic_0001>
module attributes {stable_mosaic.version = 11 : i64} {
  func.func @mlp_kernel(%arg0: memref<2x3xf32, #tpu.memory_space<vmem>>, %arg1: memref<3x64xf32, #tpu.memory_space<vmem>>, %arg2: memref<1x64xf32, #tpu.memory_space<vmem>>, %arg3: memref<1x64xf32, #tpu.memory_space<vmem>>, %arg4: memref<1x1xf32, #tpu.memory_space<vmem>>, %arg5: memref<2x1xf32, #tpu.memory_space<vmem>>) attributes {dimension_semantics = [], scalar_prefetch = 0 : i64, scratch_operands = 0 : i64, tpu.core_type = #tpu.core_type<tc>} {
    %c0 = arith.constant 0 : index
    %c0_0 = arith.constant 0 : index
    %0 = vector.load %arg0[%c0, %c0_0] : memref<2x3xf32, #tpu.memory_space<vmem>>, vector<2x3xf32>
    %1 = vector.extract_strided_slice %0 {offsets = [0, 0], sizes = [2, 1], strides = [1, 1]} : vector<2x3xf32> to vector<2x1xf32>
    %c0_1 = arith.constant 0 : index
    %c0_2 = arith.constant 0 : index
    %2 = vector.load %arg1[%c0_1, %c0_2] : memref<3x64xf32, #tpu.memory_space<vmem>>, vector<1x64xf32>
    %3 = vector.broadcast %1 : vector<2x1xf32> to vector<2x64xf32>
    %4 = vector.broadcast %2 : vector<1x64xf32> to vector<2x64xf32>
    %5 = arith.mulf %3, %4 : vector<2x64xf32>
    %6 = vector.extract_strided_slice %0 {offsets = [0, 1], sizes = [2, 1], strides = [1, 1]} : vector<2x3xf32> to vector<2x1xf32>
    %c1 = arith.constant 1 : index
    %c0_3 = arith.constant 0 : index
    %7 = vector.load %arg1[%c1, %c0_3] : memref<3x64xf32, #tpu.memory_space<vmem>>, vector<1x64xf32>
    %8 = vector.broadcast %6 : vector<2x1xf32> to vector<2x64xf32>
    %9 = vector.broadcast %7 : vector<1x64xf32> to vector<2x64xf32>
    %10 = arith.mulf %8, %9 : vector<2x64xf32>
    %11 = arith.addf %5, %10 : vector<2x64xf32>
    %12 = vector.extract_strided_slice %0 {offsets = [0, 2], sizes = [2, 1], strides = [1, 1]} : vector<2x3xf32> to vector<2x1xf32>
    %c2 = arith.constant 2 : index
    %c0_4 = arith.constant 0 : index
    %13 = vector.load %arg1[%c2, %c0_4] : memref<3x64xf32, #tpu.memory_space<vmem>>, vector<1x64xf32>
    %14 = vector.broadcast %12 : vector<2x1xf32> to vector<2x64xf32>
    %15 = vector.broadcast %13 : vector<1x64xf32> to vector<2x64xf32>
    %16 = arith.mulf %14, %15 : vector<2x64xf32>
    %17 = arith.addf %11, %16 : vector<2x64xf32>
    %c0_5 = arith.constant 0 : index
    %c0_6 = arith.constant 0 : index
    %18 = vector.load %arg2[%c0_5, %c0_6] : memref<1x64xf32, #tpu.memory_space<vmem>>, vector<1x64xf32>
    %19 = vector.broadcast %18 : vector<1x64xf32> to vector<2x64xf32>
    %20 = arith.addf %17, %19 : vector<2x64xf32>
    %21 = arith.negf %20 : vector<2x64xf32>
    %22 = math.exp %21 : vector<2x64xf32>
    %cst = arith.constant 1.000000e+00 : f32
    %23 = vector.broadcast %cst : f32 to vector<2x64xf32>
    %24 = arith.addf %23, %22 : vector<2x64xf32>
    %25 = arith.divf %23, %24 : vector<2x64xf32>
    %c0_7 = arith.constant 0 : index
    %c0_8 = arith.constant 0 : index
    %26 = vector.load %arg3[%c0_7, %c0_8] : memref<1x64xf32, #tpu.memory_space<vmem>>, vector<1x64xf32>
    %27 = vector.broadcast %26 : vector<1x64xf32> to vector<2x64xf32>
    %28 = arith.mulf %25, %27 : vector<2x64xf32>
    %cst_9 = arith.constant dense<0.000000e+00> : vector<2xf32>
    %29 = vector.multi_reduction <add>, %28, %cst_9 [1] : vector<2x64xf32> to vector<2xf32>
    %30 = vector.shape_cast %29 : vector<2xf32> to vector<2x1xf32>
    %c0_10 = arith.constant 0 : index
    %c0_11 = arith.constant 0 : index
    %31 = vector.load %arg4[%c0_10, %c0_11] : memref<1x1xf32, #tpu.memory_space<vmem>>, vector<1x1xf32>
    %32 = vector.broadcast %31 : vector<1x1xf32> to vector<2x1xf32>
    %33 = arith.addf %30, %32 : vector<2x1xf32>
    %c0_12 = arith.constant 0 : index
    %c0_13 = arith.constant 0 : index
    %34 = vector.load %arg5[%c0_12, %c0_13] : memref<2x1xf32, #tpu.memory_space<vmem>>, vector<2x1xf32>
    tpu.vector_store %arg5[%c0_12, %c0_13], %33 {strides = array<i32>} : memref<2x1xf32, #tpu.memory_space<vmem>>, vector<2x1xf32>,
    return
  }
}

</mosaic_0001>

<bundles_post_ra>
// kernel: mlleaks_mlp_forward.1
= control target key start
LH: loop header
LB: loop body
LE: loop exit
PB: predicated region body
PF: predicated region fallthrough
CT: control target
= control target key end

     0   :  { %v114_v0 = vmov 0   ;;  %v115_v2 = vmov 2   ;;  %v116_v3 = vmov 1   ;;  %vm78_vm0 = vcmask 517120   ;;  %s171_s0 = inlined_call_operand.vmem [shape: f32[2,3], index: 0, kind: input, shape index: {}]   ;;  %s172_s4 = inlined_call_operand.<no memory space> [shape: f32[1,1], index: 4, kind: input, shape index: {}]   ;;  %s173_s1 = inlined_call_operand.vmem [shape: f32[3,64], index: 1, kind: input, shape index: {}]   ;;  %s174_s2 = inlined_call_operand.vmem [shape: f32[1,64], index: 2, kind: input, shape index: {}]   ;;  %s175_s3 = inlined_call_operand.vmem [shape: f32[1,64], index: 3, kind: input, shape index: {}]   ;;  %s176_s5 = inlined_call_operand.vmem [shape: f32[2,1], index: 5, kind: output, shape index: {}]  }
   0x1   :  { %106 = vset.pattern.permute.xlu0 %v114_v0  ;;  %v22_v1 = vld [vmem:[%s171_s0] sm:$0x3]  ;;  %108 = vset.pattern.permute.xlu1 %v115_v2  ;;  %v10_v4 = vstv %s172_s4  ;;  %v98_v8 = vld [vmem:[%s173_s1 + $0x2] ss:$0 sm:$0xff]  ;;  %vm90_vm1 = vcmask 1024  }
   0x2   :  { %26 = vperm.xlu0 %106, %v22_v1   ;;  %47 = vperm.xlu1 %108, %v22_v1   ;;  %11 = vst [vmem:[#allocation2] sm:$0x1] %v10_v4  ;;  %v96_v6 = vld [vmem:[%s173_s1] ss:$0 sm:$0xff]  ;;  %v97_v7 = vld [vmem:[%s173_s1 + $0x1] ss:$0 sm:$0xff] }
   0x3   :  { %v99_v15 = vld [vmem:[%s174_s2] ss:$0 sm:$0xff] }
   0x4   :  { %v101_v21 = vld [vmem:[%s175_s3] ss:$0 sm:$0xff] }
   0x6   :  { %107 = vset.pattern.permute.xlu0 %v116_v3 }
   0x7   :  { %36 = vperm.xlu0 %107, %v22_v1  }
   0x9   :  { %v102_v25 = vld [vmem:[#allocation2] ss:$0 sm:$0xff] }
   0xb   :  { %109 = vset.pattern.permute.xlu0 %v115_v2 }
  0x81   :  { %v27_v5 = vpop.permute.xlu0 %26  ;;  %v48_v9 = vpop.permute.xlu1 %47 }
  0x82   :  { %v33_v11 = vmul.f32 %v96_v6, %v27_v5  ;;  %v54_v13 = vmul.f32 %v98_v8, %v48_v9 }
  0x86   :  { %v37_v10 = vpop.permute.xlu0 %36 }
  0x87   :  { %v43_v12 = vmul.f32 %v97_v7, %v37_v10 }
  0x89   :  { %v44_v14 = vadd.f32 %v43_v12, %v33_v11 }
  0x8b   :  { %v55_v16 = vadd.f32 %v54_v13, %v44_v14 }
  0x8d   :  { %v63_v17 = vadd.f32 %v99_v15, %v55_v16 }
  0x8f   :  { %v100_v18 = vmul.f32 -1.442695, %v63_v17 }
  0x91   :  { %110 = vpow2.f32 %v100_v18 }
  0x9b   :  { %v111_v19 = vpop.eup %110 }
  0x9c   :  { %v67_v20 = vadd.f32 1.0, %v111_v19 }
  0x9e   :  { %112 = vrcp.f32 %v67_v20 }
  0xa8   :  { %v113_v22 = vpop.eup %112 }
  0xa9   :  { %v77_v23 = vmul.f32 %v113_v22, %v101_v21 }
  0xab   :  { %v79_v24 = vsel %vm78_vm0, %v77_v23, 0.0 }
  0xac   :  { %80 = vadd.xlane.f32.xlu1 %v79_v24 }
 0x139   :  { %v81_v26 = vpop.xlane.xlu1 %80 }
 0x13a   :  { %v89_v27 = vadd.f32 %v102_v25, %v81_v26 }
 0x13c   :  { %91 = vst.msk [vmem:[%s176_s5] sm:$0x3] %vm90_vm1, %v89_v27 }

</bundles_post_ra>
